<compile_context>
chip_gen: v7x
topology: tpu7x:2x2x1
jax: 0.10.0
libtpu: 0.0.40
codegen_flags: <defaults>
</compile_context>

<pallas_src>
import functools

import jax
import jax.numpy as jnp
from jax import lax
from jax.experimental import pallas as pl
from jax.experimental.pallas import tpu as pltpu


def _vmem_capacity_bytes():
    """Per-core VMEM capacity, with a conservative fallback."""
    try:
        cap = int(pltpu.get_tpu_info().vmem_capacity_bytes)
        if cap > 0:
            return cap
    except Exception:
        pass
    return 64 << 20  # v7x per-TC physical VMEM; safe lower bound everywhere


# ---------------------------------------------------------------------------
# Fused single-pass kernel: one batch row (C, T) resident in VMEM.
#   mean over T -> sigmoid(Linear) gate -> (x + alpha) * gate
# ---------------------------------------------------------------------------
def afms_fused_kernel(x_ref, wt_ref, b_ref, alpha_ref, o_ref, *, t_total):
    # x_ref:     (1, C, T)  one batch row
    # wt_ref:    (C, C)     pre-transposed Linear weight (W^T), resident
    # b_ref:     (1, C)     Linear bias, resident
    # alpha_ref: (1, C, 1)  resident
    x = x_ref[...].astype(jnp.float32)                          # (1, C, T)
    m = jnp.sum(x, axis=-1) * (1.0 / float(t_total))            # (1, C)
    logits = jnp.dot(m, wt_ref[...],
                     preferred_element_type=jnp.float32) + b_ref[...]
    gate = jax.nn.sigmoid(logits)[:, :, None]                   # (1, C, 1)
    a = alpha_ref[...].astype(jnp.float32)
    o_ref[...] = ((x + a) * gate).astype(o_ref.dtype)


# ---------------------------------------------------------------------------
# Phase 1 (two-phase path): masked time-sum per batch row (and per T-split).
# Emits raw f32 sums; mean/Linear/sigmoid happen in the wrapper.
# ---------------------------------------------------------------------------
def afms_sum_kernel(x_ref, sum_ref, acc_ref, *,
                    t_tile, needs_mask, last_valid, lane_dense):
    # x_ref:   (1, C, t_tile)   current (split, batch, time-tile) block
    # sum_ref: (1, C, 1) f32    per-(split, batch) partial sum output
    # acc_ref: (1, C, 128) f32  (lane-dense) or (1, C) f32 scratch accumulator
    t = pl.program_id(2)
    is_last_global = jnp.logical_and(
        pl.program_id(0) == pl.num_programs(0) - 1,
        t == pl.num_programs(2) - 1)

    @pl.when(t == 0)
    def _():
        acc_ref[...] = jnp.zeros_like(acc_ref)

    def accumulate(xv):
        if lane_dense:
            ng = t_tile // 128
            part = xv[:, :, 0:128]
            for g in range(1, ng):            # static unroll: plain VPU adds
                part = part + xv[:, :, g * 128:(g + 1) * 128]
            acc_ref[...] += part
        else:
            acc_ref[...] += jnp.sum(xv, axis=-1)

    x = x_ref[...].astype(jnp.float32)        # f32 accumulation always

    if needs_mask:
        # Only the globally-last tile is ragged; interior tiles pay nothing.
        @pl.when(jnp.logical_not(is_last_global))
        def _():
            accumulate(x)

        @pl.when(is_last_global)
        def _():
            col = lax.broadcasted_iota(jnp.int32, (1, 1, t_tile), 2)
            accumulate(jnp.where(col < last_valid, x, 0.0))
    else:
        accumulate(x)

    @pl.when(t == pl.num_programs(2) - 1)
    def _():
        if lane_dense:
            total = jnp.sum(acc_ref[...], axis=-1)   # single cross-lane reduce
        else:
            total = acc_ref[...]
        sum_ref[...] = total[:, :, None]             # (1, C, 1)


# ---------------------------------------------------------------------------
# Phase 2 (two-phase path): out = (x + alpha) * gate, fully parallel.
# ---------------------------------------------------------------------------
def afms_scale_kernel(x_ref, alpha_ref, gate_ref, o_ref):
    x = x_ref[...].astype(jnp.float32)
    a = alpha_ref[...].astype(jnp.float32)
    o_ref[...] = ((x + a) * gate_ref[...]).astype(o_ref.dtype)


# ---------------------------------------------------------------------------
# Wrapper
# ---------------------------------------------------------------------------
def afms_forward(x, w, b, alpha, *, force_two_phase=False, t_tile_override=None):
    """x: (B, C, T), w: (C, C) [PyTorch Linear weight], b: (C,), alpha: (C, 1)."""
    B, C, T = x.shape
    itemsize = jnp.dtype(x.dtype).itemsize

    vmem_cap = _vmem_capacity_bytes()
    usable = int((vmem_cap * 3) // 4)          # generation-aware scoped limit

    w_t = jnp.asarray(w).T.astype(jnp.float32)           # (C, C): m @ W^T
    b2d = jnp.asarray(b).reshape(1, C).astype(jnp.float32)
    alpha3 = jnp.asarray(alpha).reshape(1, C, 1)

    # ---- Fused single-pass path when one (C, T) row slab fits VMEM ---------
    slab_in = C * T * itemsize
    slab_f32 = C * T * 4
    param_bytes = (C * C + 2 * C) * 4
    fused_need = 4 * slab_in + 2 * slab_f32 + param_bytes + (2 << 20)

    if (not force_two_phase) and fused_need <= usable:
        return pl.pallas_call(
            functools.partial(afms_fused_kernel, t_total=T),
            out_shape=jax.ShapeDtypeStruct((B, C, T), x.dtype),
            grid=(B,),
            in_specs=[
                pl.BlockSpec((1, C, T), lambda bi: (bi, 0, 0)),
                pl.BlockSpec((C, C), lambda bi: (0, 0)),        # W^T, resident
                pl.BlockSpec((1, C), lambda bi: (0, 0)),        # bias, resident
                pl.BlockSpec((1, C, 1), lambda bi: (0, 0, 0)),  # alpha, resident
            ],
            out_specs=pl.BlockSpec((1, C, T), lambda bi: (bi, 0, 0)),
            compiler_params=pltpu.CompilerParams(
                dimension_semantics=("parallel",),
                vmem_limit_bytes=usable,
            ),
        )(x, w_t, b2d, alpha3)

    # ---- Two-phase fallback: byte-budgeted T tiles --------------------------
    if t_tile_override is not None:
        t_tile = int(t_tile_override)
    else:
        tile_target = min(8 << 20, usable // 8)   # ~6 MiB on v7x, 8 MiB v5e/v6e
        t_tile = max(128, (tile_target // (C * itemsize)) // 128 * 128)
    if t_tile >= T:
        t_tile = T
    nt = pl.cdiv(T, t_tile)
    needs_mask = (nt * t_tile) != T
    last_valid = T - (nt - 1) * t_tile             # valid cols in the last tile
    lane_dense = (t_tile % 128) == 0

    # Split the T reduction 2-ways when B==1 so v7x's 2nd TensorCore has work.
    n_split = 2 if (B == 1 and nt >= 2 and nt % 2 == 0) else 1
    nt_per = nt // n_split

    acc_shape = (1, C, 128) if lane_dense else (1, C)

    # Phase 1: per-(split, batch) time sums.
    sums = pl.pallas_call(
        functools.partial(afms_sum_kernel, t_tile=t_tile, needs_mask=needs_mask,
                          last_valid=last_valid, lane_dense=lane_dense),
        out_shape=jax.ShapeDtypeStruct((n_split * B, C, 1), jnp.float32),
        grid=(n_split, B, nt_per),
        in_specs=[pl.BlockSpec((1, C, t_tile),
                               lambda s, bi, ti: (bi, 0, s * nt_per + ti))],
        out_specs=pl.BlockSpec((1, C, 1), lambda s, bi, ti: (s * B + bi, 0, 0)),
        scratch_shapes=[pltpu.VMEM(acc_shape, jnp.float32)],
        compiler_params=pltpu.CompilerParams(
            dimension_semantics=("parallel", "parallel", "arbitrary"),
            vmem_limit_bytes=usable,
        ),
    )(x)

    # Gate: one well-shaped (B, C) x (C, C) GEMM in plain XLA (tiny).
    total = sums.reshape(n_split, B, C).sum(axis=0)          # (B, C) f32
    mean = total * (1.0 / float(T))
    gate3 = jax.nn.sigmoid(mean @ w_t + b2d)[:, :, None]     # (B, C, 1) f32

    # Phase 2: elementwise scale.
    out = pl.pallas_call(
        afms_scale_kernel,
        out_shape=jax.ShapeDtypeStruct((B, C, T), x.dtype),
        grid=(B, nt),
        in_specs=[
            pl.BlockSpec((1, C, t_tile), lambda bi, ti: (bi, 0, ti)),
            pl.BlockSpec((1, C, 1), lambda bi, ti: (0, 0, 0)),   # alpha, resident
            pl.BlockSpec((1, C, 1), lambda bi, ti: (bi, 0, 0)),  # per-batch gate
        ],
        out_specs=pl.BlockSpec((1, C, t_tile), lambda bi, ti: (bi, 0, ti)),
        compiler_params=pltpu.CompilerParams(
            dimension_semantics=("parallel", "parallel"),
            vmem_limit_bytes=usable,
        ),
    )(x, alpha3, gate3)

    return out


def afms_reference(x, w, b, alpha):
    """Pure-JAX reference mirroring the PyTorch module."""
    m = jnp.mean(x.astype(jnp.float32), axis=-1)             # (B, C)
    y = jax.nn.sigmoid(m @ w.T.astype(jnp.float32) + b)      # (B, C)
    return ((x.astype(jnp.float32) + alpha[None, :, :]) * y[:, :, None]).astype(x.dtype)


if __name__ == "__main__":
    B, C, T = 2, 4, 16

    key = jax.random.PRNGKey(0)
    kx, kw, kb = jax.random.split(key, 3)

    x = jax.random.normal(kx, (B, C, T), dtype=jnp.float32)

    # Deterministic synthetic parameters matching the module's shapes:
    #   alpha: ones((C, 1)) as in __init__; fc: Linear(C, C) weight/bias.
    alpha = jnp.ones((C, 1), dtype=jnp.float32)
    bound = 1.0 / jnp.sqrt(jnp.float32(C))
    w = jax.random.uniform(kw, (C, C), minval=-bound, maxval=bound, dtype=jnp.float32)
    b = jax.random.uniform(kb, (C,), minval=-bound, maxval=bound, dtype=jnp.float32)

    # 1) Fused single-pass path (row slab easily fits VMEM).
    out = jax.block_until_ready(afms_forward(x, w, b, alpha))
    ref = afms_reference(x, w, b, alpha)
    assert out.shape == (B, C, T)
    assert jnp.allclose(out, ref, atol=1e-5, rtol=1e-5), "mismatch (fused path)"

    # 2) Two-phase path: tiled T with a ragged, masked last tile.
    T2 = 300
    x2 = jax.random.normal(kx, (B, C, T2), dtype=jnp.float32)
    out2 = jax.block_until_ready(
        afms_forward(x2, w, b, alpha, force_two_phase=True, t_tile_override=128))
    ref2 = afms_reference(x2, w, b, alpha)
    assert jnp.allclose(out2, ref2, atol=1e-5, rtol=1e-5), "mismatch (tiled T)"

    # 3) Two-phase path with B=1: exercises the 2-way T-split (v7x megacore).
    T3 = 512
    x3 = jax.random.normal(kx, (1, C, T3), dtype=jnp.float32)
    out3 = jax.block_until_ready(
        afms_forward(x3, w, b, alpha, force_two_phase=True, t_tile_override=128))
    ref3 = afms_reference(x3, w, b, alpha)
    assert jnp.allclose(out3, ref3, atol=1e-5, rtol=1e-5), "mismatch (split T)"

    print("KERNEL_OK")
</pallas_src>

<mosaic_0001>
module attributes {stable_mosaic.version = 11 : i64} {
  func.func @afms_fused_kernel(%arg0: i32, %arg1: memref<1x4x16xf32, #tpu.memory_space<vmem>>, %arg2: memref<4x4xf32, #tpu.memory_space<vmem>>, %arg3: memref<1x4xf32, #tpu.memory_space<vmem>>, %arg4: memref<1x4x1xf32, #tpu.memory_space<vmem>>, %arg5: memref<1x4x16xf32, #tpu.memory_space<vmem>>) attributes {dimension_semantics = [#tpu.dimension_semantics<parallel>], iteration_bounds = array<i64: 2>, scalar_prefetch = 0 : i64, scratch_operands = 0 : i64, tpu.core_type = #tpu.core_type<tc>, window_params = [{transform_indices = @transform_0, window_bounds = array<i64: 1, 4, 16>}, {pipeline_mode = #tpu.pipeline_mode<synchronous>, transform_indices = @transform_1, window_bounds = array<i64: 4, 4>}, {pipeline_mode = #tpu.pipeline_mode<synchronous>, transform_indices = @transform_2, window_bounds = array<i64: 1, 4>}, {pipeline_mode = #tpu.pipeline_mode<synchronous>, transform_indices = @transform_3, window_bounds = array<i64: 1, 4, 1>}, {transform_indices = @transform_4, window_bounds = array<i64: 1, 4, 16>}]} {
    %c0 = arith.constant 0 : index
    %c0_0 = arith.constant 0 : index
    %c0_1 = arith.constant 0 : index
    %0 = vector.load %arg1[%c0, %c0_0, %c0_1] : memref<1x4x16xf32, #tpu.memory_space<vmem>>, vector<1x4x16xf32>
    %cst = arith.constant dense<0.000000e+00> : vector<1x4xf32>
    %1 = vector.multi_reduction <add>, %0, %cst [2] : vector<1x4x16xf32> to vector<1x4xf32>
    %cst_2 = arith.constant 6.250000e-02 : f32
    %2 = vector.broadcast %cst_2 : f32 to vector<1x4xf32>
    %3 = arith.mulf %1, %2 : vector<1x4xf32>
    %c0_3 = arith.constant 0 : index
    %c0_4 = arith.constant 0 : index
    %4 = vector.load %arg2[%c0_3, %c0_4] : memref<4x4xf32, #tpu.memory_space<vmem>>, vector<4x4xf32>
    %cst_5 = arith.constant dense<0.000000e+00> : vector<1x4xf32>
    %5 = tpu.matmul %3, %4, %cst_5 {dimension_numbers = #tpu.dot_dimension_numbers<[1], [0], [0], [1], [0, 0, 1, 1], [], []>} : vector<1x4xf32>, vector<4x4xf32>, vector<1x4xf32> -> vector<1x4xf32>
    %c0_6 = arith.constant 0 : index
    %c0_7 = arith.constant 0 : index
    %6 = vector.load %arg3[%c0_6, %c0_7] : memref<1x4xf32, #tpu.memory_space<vmem>>, vector<1x4xf32>
    %7 = arith.addf %5, %6 : vector<1x4xf32>
    %8 = arith.negf %7 : vector<1x4xf32>
    %9 = math.exp %8 : vector<1x4xf32>
    %cst_8 = arith.constant 1.000000e+00 : f32
    %10 = vector.broadcast %cst_8 : f32 to vector<1x4xf32>
    %11 = arith.addf %10, %9 : vector<1x4xf32>
    %12 = arith.divf %10, %11 : vector<1x4xf32>
    %13 = vector.shape_cast %12 : vector<1x4xf32> to vector<1x4x1xf32>
    %c0_9 = arith.constant 0 : index
    %c0_10 = arith.constant 0 : index
    %c0_11 = arith.constant 0 : index
    %14 = vector.load %arg4[%c0_9, %c0_10, %c0_11] : memref<1x4x1xf32, #tpu.memory_space<vmem>>, vector<1x4x1xf32>
    %15 = vector.broadcast %14 : vector<1x4x1xf32> to vector<1x4x16xf32>
    %16 = arith.addf %0, %15 : vector<1x4x16xf32>
    %17 = vector.broadcast %13 : vector<1x4x1xf32> to vector<1x4x16xf32>
    %18 = arith.mulf %16, %17 : vector<1x4x16xf32>
    %c0_12 = arith.constant 0 : index
    %c0_13 = arith.constant 0 : index
    %c0_14 = arith.constant 0 : index
    %19 = vector.load %arg5[%c0_12, %c0_13, %c0_14] : memref<1x4x16xf32, #tpu.memory_space<vmem>>, vector<1x4x16xf32>
    tpu.vector_store %arg5[%c0_12, %c0_13, %c0_14], %18 {strides = array<i32>} : memref<1x4x16xf32, #tpu.memory_space<vmem>>, vector<1x4x16xf32>,
    return
  }
  func.func @transform_0(%arg0: i32) -> (i32, i32, i32) {
    %c0_i32 = arith.constant 0 : i32
    %c0_i32_0 = arith.constant 0 : i32
    %c0_i32_1 = arith.constant 0 : i32
    return %arg0, %c0_i32, %c0_i32_0 : i32, i32, i32
  }
  func.func @transform_1(%arg0: i32) -> (i32, i32) {
    %c0_i32 = arith.constant 0 : i32
    %c0_i32_0 = arith.constant 0 : i32
    %c0_i32_1 = arith.constant 0 : i32
    return %c0_i32, %c0_i32_0 : i32, i32
  }
  func.func @transform_2(%arg0: i32) -> (i32, i32) {
    %c0_i32 = arith.constant 0 : i32
    %c0_i32_0 = arith.constant 0 : i32
    %c0_i32_1 = arith.constant 0 : i32
    return %c0_i32, %c0_i32_0 : i32, i32
  }
  func.func @transform_3(%arg0: i32) -> (i32, i32, i32) {
    %c0_i32 = arith.constant 0 : i32
    %c0_i32_0 = arith.constant 0 : i32
    %c0_i32_1 = arith.constant 0 : i32
    %c0_i32_2 = arith.constant 0 : i32
    return %c0_i32, %c0_i32_0, %c0_i32_1 : i32, i32, i32
  }
  func.func @transform_4(%arg0: i32) -> (i32, i32, i32) {
    %c0_i32 = arith.constant 0 : i32
    %c0_i32_0 = arith.constant 0 : i32
    %c0_i32_1 = arith.constant 0 : i32
    return %arg0, %c0_i32, %c0_i32_0 : i32, i32, i32
  }
}

</mosaic_0001>

<bundles_post_ra>
// kernel: tpu_custom_call.1
= control target key start
LH: loop header
LB: loop body
LE: loop exit
PB: predicated region body
PF: predicated region fallthrough
CT: control target
= control target key end

     0   :  { %9 = vsyncpa [#allocation3], 0  ;;  %s791_s0 = inlined_call_operand.hbm [shape: f32[2,4,16], index: 0, kind: input, shape index: {}]   ;;  %s792_s1 = inlined_call_operand.vmem [shape: f32[4,4], index: 1, kind: input, shape index: {}]   ;;  %s793_s2 = inlined_call_operand.vmem [shape: f32[1,4], index: 2, kind: input, shape index: {}]   ;;  %s794_s3 = inlined_call_operand.vmem [shape: f32[1,4,1], index: 3, kind: input, shape index: {}]   ;;  %s795_s4 = inlined_call_operand.hbm [shape: f32[2,4,16], index: 4, kind: output, shape index: {}]  }
   0x1   :  { %11 = vsyncpa [#allocation3 + $0x1], 0 }
   0x2   :  { %12 = vsyncpa [#allocation4], 0 }
   0x3   :  { %14 = vsyncpa [#allocation4 + $0x1], 0  ;;  %s615_s15 = smov 0   ;;  %s617_s16 = smov 0  }
   0x4   :  { %s619_s17 = smov 0   ;;  %s621_s18 = smov 0  }
   0x5 LB: > { %s636_s19 = sadd.s32 4294967295, %s583_s18   ;;  %s411_s20 = sadd.s32 4294967294, %s583_s18   ;;  %s583_s18 = sphi %s621_s18, %s810_s18   ;;  %s579_s17 = sphi %s619_s17, %s809_s17   ;;  %s575_s16 = sphi %s617_s16, %s808_s16   ;;  %s571_s15 = sphi %s615_s15, %s807_s15  }
   0x6   : > { %s640_s21 = sadd.s32 1, %s583_s18   ;;  %s27_s22 = sadd.s32 1, %s579_s17 }
   0x7   : > { %s24_s23 = ssub.s32 %s583_s18, %s640_s21  ;;  %p34_p0 = scmp.ne.s32.totalorder %s579_s17, %s575_s16 }
   0x8   : > { %p25_p1 = scmp.eq.s32.totalorder %s24_s23, 0  ;;  %p35_p2 = scmp.eq.s32.totalorder %s583_s18, 0 }
   0x9   : > { %p40_p3 = scmp.ne.s32.totalorder %s575_s16, %s571_s15  ;;  %p41_p4 = scmp.eq.s32.totalorder %s636_s19, 0 }
   0xa   : > { %s652_s24 = scalar_select %p25_p1, %s579_s17, %s27_s22  }
   0xb   : > { %p654_p5 = por %p35_p2, %p34_p0  ;;  %p658_p6 = por %p41_p4, %p40_p3 }
   0xc   : > { %p127_p7 = scmp.eq.s32.totalorder %s636_s19, 1  ;;  %p133_p8 = scmp.eq.s32.totalorder %s411_s20, 1 }
   0xd   : > { %p445_p10 = scmp.lt.s32.totalorder %s583_s18, 2  ;;  %s162_s29 = sand.u32 1, %s579_s17  }
   0xe   : > { %p665_p11 = por %p127_p7, %p34_p0  ;;  %p669_p12 = por %p133_p8, %p40_p3 }
   0xf   : > { %s415_s30 = sshll.u32 %s583_s18, 6  ;;  %s414_s5 = sshll.u32 %s162_s29, 2 }
  0x10   : > { %s799_s27 = scalar_select %p665_p11, 1, 0 }
  0x11   : > { %s800_s28 = scalar_select %p669_p12, 1, 0 }
  0x12   : > { %s678_s8 = scalar_lea.hbm %s791_s0, %s415_s30  ;;  %s166_s9 = scalar_lea.vmem [#allocation2], %s414_s5 }
  0x13   : > { %s173_s10 = sshll.u32 %s166_s9, 4  ;;  %p682_p13 = pnand %p445_p10, %p654_p5  ;;  %s686_s10 = int_to_ptr.vmem [resolvable:$true] %s173_s10 }
  0x14   : > { %s163_s12 = scalar_lea.sflag [#allocation3], %s162_s29  ;;  %s487_s13 = scalar_lea.hbm %s678_s8, 64 }
  0x15   : > { %p488_p2 = scmp.ne.s32.totalorder %s678_s8, %s487_s13  ;;  %p489_p3 = pneg %p682_p13 }
  0x16   : > { %s492_s22 = scalar_lea.hbm %s791_s0, 128  ;;  %p493_p5 = scmp.lt.u32.totalorder %s678_s8, %s791_s0 }
  0x17   : > { %p490_p4 = pnand %p489_p3, %p488_p2  ;;  %p494_p8 = scmp.lt.u32.totalorder %s492_s22, %s487_s13 }
  0x18   : > { %p496_p9 = scmp.lt.u32.totalorder %s487_s13, %s678_s8 }
  0x19   : > { %p491_p7 = pneg %p490_p4  ;;  %p495_p10 = por %p494_p8, %p493_p5 }
  0x1b   : > { %p497_p0 = por %p496_p9, %p495_p10 }
  0x1d   : > { %p498_p1 = pnand %p497_p0, %p491_p7 }
  0x1f   : > { %501 = shalt.err (!%p498_p1)
}
  0x20   : > { %s502_s29 = scalar_lea.vmem %s686_s10, 64  ;;  %s585_s30 = smov [#allocation2]  }
  0x21   : > { %p503_p2 = scmp.ne.s32.totalorder %s686_s10, %s502_s29  ;;  %s507_s5 = sshll.u32 %s585_s30, 4  ;;  %s508_s5 = int_to_ptr.vmem [resolvable:$false] %s507_s5 }
  0x22   : > { %s509_s6 = scalar_lea.vmem %s508_s5, 128  ;;  %p510_p11 = scmp.lt.s32.totalorder %s686_s10, %s508_s5 }
  0x23   : > { %p505_p4 = pnand %p503_p2, %p489_p3  ;;  %p511_p5 = scmp.lt.s32.totalorder %s509_s6, %s502_s29 }
  0x25   : > { %p506_p12 = pneg %p505_p4  ;;  %p512_p8 = por %p511_p5, %p510_p11 }
  0x27   : > { %p513_p9 = pnand %p512_p8, %p506_p12 }
  0x29   : > { %516 = shalt.err (!%p513_p9)
}
  0x2a   : > { %440 = dma.hbm_to_vmem [thread:$0]  (!%p682_p13), %s678_s8, 64, %s686_s10, %s163_s12  }
  0x2b   : > { %p802_p0 = scmp.lt.s32.totalorder %s583_s18, 3  ;;  %p803_p1 = scmp.ge.s32.totalorder %s583_s18, 1 }
  0x2d   : > { %p179_p3 = pnand %p803_p1, %p802_p0 }
  0x2e   : > { %s720_s7 = sand.u32 (!%p179_p3), 1, %s575_s16  }
  0x2f   : > { %182 = sbr.rel (%p179_p3) target bundleno = 576 (0x240), region = 36  ;;  %s417_s9 = sshll.u32 (!%p179_p3), %s720_s7, 2 }
  0x30   : > { %s185_s13 = scalar_lea.sflag (!%p179_p3), [#allocation3], %s720_s7  ;;  %s188_s11 = scalar_lea.vmem (!%p179_p3), [#allocation2], %s417_s9 }
  0x36   : > { %562 = dma.done.wait (%p658_p6), %s185_s13, 64  }
  0x37   : > { %564 = vsyncadd (%p658_p6), %s185_s13, 4294967232  ;;  %vm214_vm0 = vcmask 125952   ;;  %v213_v0 = vld [vmem:[%s188_s11] sm:$0xf]  ;;  %v586_v2 = vmov 0.0   ;;  %vm231_vm1 = vcmask 1043456   ;;  %v222_v4 = vlaneseq }
  0x38   : > { %v215_v1 = vsel %vm214_vm0, %v213_v0, 0.0  ;;  %428 = vmatprep.subr.mxu0 %v586_v2  ;;  %v219_v3 = vld [vmem:[%s792_s1] sm:$0xf]  ;;  %vm587_vm2 = vmmov 0   ;;  %vm228_vm3 = vcmask 31744   ;;  %v588_v11 = vmov 0  }
  0x39   : > { %216 = vadd.xlane.f32.xlu0 %v215_v1  ;;  %429 = vmatpush3.msk.msra.mxu0 %vm231_vm1, %v219_v3  ;;  %v223_v5 = vand.u32 127, %v222_v4  ;;  %v225_v6 = vshrl.u32 %v222_v4, 7  ;;  %v318_v12 = vld [vmem:[%s794_s3] sm:$0xf]  ;;  %s423_s22 = sshll.u32 %s636_s19, 6  ;;  %s212_s23 = scalar_lea.vmem [#allocation5], %s417_s9 }
  0x3a   : > { %430 = vmatprep.mubr.msk.f32.mxu0 %vm587_vm2, %v586_v2  ;;  %482 = vset.pattern.permute.xlu0 %v588_v11  ;;  %v220_v13 = vld [vmem:[%s793_s2] sm:$0x1]  ;;  %s341_s25 = sshll.u32 %s212_s23, 4  ;;  %s746_s5 = scalar_lea.hbm %s795_s4, %s423_s22  ;;  %s748_s25 = int_to_ptr.vmem [resolvable:$true] %s341_s25 }
  0x3b   : > { %v226_v7 = vsub.s32 %v223_v5, %v225_v6  ;;  %v313_v20 = vsub.s32 0, %v225_v6  ;;  %s328_s6 = scalar_lea.sflag [#allocation4], %s720_s7  ;;  %s517_s13 = scalar_lea.vmem %s748_s25, 64 }
  0x3c   : > { %p518_p6 = scmp.ne.s32.totalorder %s748_s25, %s517_s13  ;;  %p804_p11 = scmp.ne.s32.totalorder %s799_s27, 0 }
  0x3d   : > { %s589_s19 = smov [#allocation5]  }
  0x3e   : > { %p519_p12 = pnand %p518_p6, %p804_p11  ;;  %s521_s9 = sshll.u32 %s589_s19, 4  ;;  %s522_s9 = int_to_ptr.vmem [resolvable:$false] %s521_s9 }
  0x3f   : > { %s523_s11 = scalar_lea.vmem %s522_s9, 128  ;;  %p524_p7 = scmp.lt.s32.totalorder %s748_s25, %s522_s9 }
  0x40   : > { %p520_p13 = pneg %p519_p12  ;;  %p525_p10 = scmp.lt.s32.totalorder %s523_s11, %s517_s13 }
  0x42   : > { %p526_p2 = por %p525_p10, %p524_p7 }
  0x44   : > { %p527_p4 = pnand %p526_p2, %p520_p13 }
  0x4f   : > { %321 = vperm.xlu0 %482, %v318_v12  }
  0xc6   : > { %v217_v8 = vpop.xlane.xlu0 %216 }
  0xc7   : > { %v218_v9 = vmul.f32 0.0625, %v217_v8 }
  0xc9   : > { %v227_v10 = vrot.slane %v218_v9, %v226_v7 }
  0xcb   : > { %431 = vmatmul.mubr.msk.f32.vlgmr.msra.gmra.mrb[0].mxu0 %vm228_vm3, %v227_v10 }
  0xce   : > { %v322_v23 = vpop.permute.xlu0 %321 }
  0xcf   : > { %v324_v24 = vadd.f32 %v322_v23, %v213_v0 }
 0x19e   : > { %v301_v14 = vpop.f32.mrb[0].mxu0 }
 0x19f   : > { %v302_v15 = vadd.f32 %v301_v14, %v220_v13  ;;  %v432_v16 = vpop.f32.mrb[1].mxu0 }
 0x1a1   : > { %v421_v17 = vmul.f32 -1.442695, %v302_v15 }
 0x1a3   : > { %483 = vpow2.f32 %v421_v17 }
 0x1ad   : > { %v484_v18 = vpop.eup %483 }
 0x1ae   : > { %v308_v19 = vadd.f32 1.0, %v484_v18 }
 0x1b0   : > { %485 = vrcp.f32 %v308_v19 }
 0x1ba   : > { %v486_v21 = vpop.eup %485 }
 0x1bb   : > { %v314_v22 = vrot.slane %v486_v21, %v313_v20 }
 0x1bd   : > { %316 = vbcast.lane.b32.xlu1 %v314_v22, 256 }
 0x22f   : > { %v317_v25 = vpop.permute.xlu1 %316 }
 0x230   : > { %v325_v26 = vmul.f32 %v324_v24, %v317_v25 }
 0x232   : > { %326 = vst.msk [vmem:[%s212_s23] sm:$0xf] %vm214_vm0, %v325_v26 }
 0x233   : > { %530 = shalt.err (!%p527_p4)
}
 0x234   : > { %s531_s7 = scalar_lea.hbm %s746_s5, 64  ;;  %s535_s26 = scalar_lea.hbm %s795_s4, 128 }
 0x235   : > { %p532_p5 = scmp.ne.s32.totalorder %s746_s5, %s531_s7  ;;  %p536_p0 = scmp.lt.u32.totalorder %s746_s5, %s795_s4 }
 0x236   : > { %p537_p1 = scmp.lt.u32.totalorder %s535_s26, %s531_s7  ;;  %p539_p6 = scmp.lt.u32.totalorder %s531_s7, %s746_s5 }
 0x237   : > { %p533_p8 = pnand %p532_p5, %p804_p11 }
 0x238   : > { %p538_p3 = por %p537_p1, %p536_p0 }
 0x239   : > { %p534_p9 = pneg %p533_p8 }
 0x23a   : > { %p540_p12 = por %p539_p6, %p538_p3 }
 0x23c   : > { %p541_p13 = pnand %p540_p12, %p534_p9 }
 0x23e   : > { %544 = shalt.err (!%p541_p13)
}
 0x23f   : > { %435 = dma.vmem_to_hbm [thread:$0]  (%p804_p11), %s748_s25, 64, %s746_s5, %s328_s6  }
 0x240 PF: > { %s353_s20 = sand.u32 1, %s571_s15   ;;  %p805_p7 = scmp.ne.s32.totalorder %s800_s28, 0 }
 0x241   : > { %p806_p10 = scmp.ge.s32.totalorder %s583_s18, 2  ;;  %s354_s22 = scalar_lea.sflag [#allocation4], %s353_s20 }
 0x243   : > { %p442_p2 = pnand %p806_p10, %p805_p7 }
 0x245   : > { %566 = dma.done.wait (!%p442_p2), %s354_s22, 64  }
 0x246   : > { %568 = vsyncadd (!%p442_p2), %s354_s22, 4294967232  ;;  %p17_p4 = scmp.ge.s32.totalorder %s640_s21, 4   ;;  %s807_s15 = smov %s575_s16 }
 0x247   : > { %s808_s16 = smov %s579_s17  ;;  %s809_s17 = smov %s652_s24 }
 0x248   : > { %s810_s18 = smov %s640_s21  ;;  %19 = sbr.rel (!%p17_p4) target bundleno = 5 (0x5), region = 81 }
 0x24f   :  { %359 = vsyncpa [#allocation3], 1 }
 0x250   :  { %361 = vsyncpa [#allocation3 + $0x1], 1 }
 0x251   :  { %362 = vsyncpa [#allocation4], 1 }
 0x252   :  { %364 = vsyncpa [#allocation4 + $0x1], 1 }

</bundles_post_ra>
